<compile_context>
chip_gen: v6e
topology: v6e:2x2x1
jax: 0.10.0
libtpu: 0.0.40
codegen_flags: <defaults>
</compile_context>

<pallas_src>
import functools

import jax
import jax.numpy as jnp
from jax.experimental import pallas as pl
from jax.experimental.pallas import tpu as pltpu

_LANE = 128
_SUBLANE = 8


def _round_up(n, m):
    return ((n + m - 1) // m) * m


def _choose_tb(batch, max_tb=2048):
    """Largest-reasonable batch tile: cap at max_tb rows, but keep >= 2 grid
    steps when the batch allows so the 'parallel' axis can shard across the
    two v7x TensorCores."""
    bp = _round_up(max(batch, 1), _SUBLANE)
    if bp <= 2 * _SUBLANE:
        return bp
    n_tiles = max(2, -(-bp // max_tb))
    return _round_up(-(-bp // n_tiles), _SUBLANE)


def mlp_kernel(x_ref,
               w1_ref, b1_ref,
               w2_ref, b2_ref,
               w3_ref, b3_ref,
               w4_ref, b4_ref,
               w5_ref, b5_ref,
               o_ref):
    """Fused forward for one (tb, in_size) batch tile, entirely in VMEM."""
    h = x_ref[...].astype(jnp.bfloat16)  # bf16 MXU inputs, f32 accumulation

    h = jnp.dot(h, w1_ref[...], preferred_element_type=jnp.float32) + b1_ref[...]
    h = jnp.maximum(h, 0.0).astype(jnp.bfloat16)

    h = jnp.dot(h, w2_ref[...], preferred_element_type=jnp.float32) + b2_ref[...]
    h = jnp.maximum(h, 0.0).astype(jnp.bfloat16)

    h = jnp.dot(h, w3_ref[...], preferred_element_type=jnp.float32) + b3_ref[...]
    h = jnp.maximum(h, 0.0).astype(jnp.bfloat16)

    h = jnp.dot(h, w4_ref[...], preferred_element_type=jnp.float32) + b4_ref[...]
    h = jnp.maximum(h, 0.0).astype(jnp.bfloat16)

    # fc5: no activation; output tile is lane-dense (padded to 128 cols).
    h = jnp.dot(h, w5_ref[...], preferred_element_type=jnp.float32) + b5_ref[...]
    o_ref[...] = h.astype(o_ref.dtype)


def prepare_params(params):
    """One-time param prep (hoisted out of the forward path):
    zero-pad hidden/output feature dims to 128-lane multiples, cast weights
    to bf16. The input feature dim of W1 is deliberately left unpadded."""
    dims = [params[0][0].shape[0]] + [w.shape[1] for (w, _) in params]
    dims_p = [dims[0]] + [_round_up(d, _LANE) for d in dims[1:]]
    prepared = []
    for i, (w, b) in enumerate(params):
        wp = jnp.pad(
            w, ((0, dims_p[i] - w.shape[0]), (0, dims_p[i + 1] - w.shape[1]))
        ).astype(jnp.bfloat16)
        bp = jnp.pad(b, ((0, 0), (0, dims_p[i + 1] - b.shape[1]))).astype(jnp.float32)
        prepared.append((wp, bp))
    return prepared


def simple_nn_old_forward(x, prepared_params, num_classes, *, tb=None):
    """x: (B, input_size) f32. prepared_params: output of prepare_params."""
    B, in_size = x.shape
    out_pad = prepared_params[-1][0].shape[1]  # padded num_classes (128-mult)

    if tb is None:
        tb = _choose_tb(B)
    tb = max(_SUBLANE, _round_up(tb, _SUBLANE))
    Bp = _round_up(B, tb)
    grid = (Bp // tb,)

    # Only pad batch rows (no column pad of x -> no 4x HBM round-trip).
    x_p = x if Bp == B else jnp.pad(x, ((0, Bp - B), (0, 0)))

    # x / out tiles stream over the batch; weights & biases stay resident
    # (constant index_map -> fetched once, never re-DMA'd).
    # TODO(synk): could single-buffer the constant weight blocks via
    # pipeline_mode=pl.Buffered(1) to shave ~0.5 MiB VMEM.
    in_specs = [pl.BlockSpec((tb, in_size), lambda i: (i, 0))]
    flat_args = [x_p]
    for wp, bp in prepared_params:
        in_specs.append(pl.BlockSpec(wp.shape, lambda i: (0, 0)))
        in_specs.append(pl.BlockSpec(bp.shape, lambda i: (0, 0)))
        flat_args.append(wp)
        flat_args.append(bp)

    out_spec = pl.BlockSpec((tb, out_pad), lambda i: (i, 0))

    k_dims = [in_size] + [wp.shape[1] for wp, _ in prepared_params]
    flops = 2 * Bp * sum(k_dims[i] * k_dims[i + 1] for i in range(len(prepared_params)))
    bytes_accessed = (
        x_p.size * x_p.dtype.itemsize
        + sum(wp.size * 2 + bp.size * 4 for wp, bp in prepared_params)
        + Bp * out_pad * 4
    )

    out_p = pl.pallas_call(
        mlp_kernel,
        out_shape=jax.ShapeDtypeStruct((Bp, out_pad), jnp.float32),
        grid=grid,
        in_specs=in_specs,
        out_specs=out_spec,
        compiler_params=pltpu.CompilerParams(
            dimension_semantics=("parallel",),
            vmem_limit_bytes=32 * 1024 * 1024,
        ),
        cost_estimate=pl.CostEstimate(
            flops=flops, transcendentals=0, bytes_accessed=bytes_accessed
        ),
    )(*flat_args)

    return out_p[:B, :num_classes]


def init_params(key, input_size, num_classes):
    """PyTorch nn.Linear default init: U[-1/sqrt(fan_in), +1/sqrt(fan_in)]."""
    dims = [input_size, 128, 256, 128, 64, num_classes]
    params = []
    for i in range(5):
        fan_in, fan_out = dims[i], dims[i + 1]
        key, kw, kb = jax.random.split(key, 3)
        bound = 1.0 / (fan_in ** 0.5)
        w = jax.random.uniform(kw, (fan_in, fan_out), jnp.float32, -bound, bound)
        b = jax.random.uniform(kb, (1, fan_out), jnp.float32, -bound, bound)
        params.append((w, b))
    return params


def reference_forward(x, params):
    h = x
    for i, (w, b) in enumerate(params):
        h = h @ w + b
        if i < len(params) - 1:
            h = jnp.maximum(h, 0.0)
    return h


if __name__ == "__main__":
    input_size = 32
    num_classes = 10
    batch = 8

    key = jax.random.PRNGKey(0)
    key, kx = jax.random.split(key)
    x = jax.random.normal(kx, (batch, input_size), jnp.float32)
    params = init_params(key, input_size, num_classes)

    prepared = prepare_params(params)  # one-time padding + bf16 cast

    fwd = jax.jit(functools.partial(simple_nn_old_forward, num_classes=num_classes))
    out = fwd(x, prepared)
    out = jax.block_until_ready(out)

    ref = reference_forward(x, params)  # f32 reference
    assert out.shape == (batch, num_classes), out.shape
    # bf16 MXU inputs -> loosened tolerance vs the f32 reference.
    assert jnp.allclose(out, ref, atol=2e-2, rtol=2e-2), "mismatch vs reference"

    print("KERNEL_OK")
</pallas_src>

<mosaic_0001>
module attributes {stable_mosaic.version = 11 : i64} {
  func.func @mlp_kernel(%arg0: i32, %arg1: memref<8x32xf32, #tpu.memory_space<vmem>>, %arg2: memref<32x128xbf16, #tpu.memory_space<vmem>>, %arg3: memref<1x128xf32, #tpu.memory_space<vmem>>, %arg4: memref<128x256xbf16, #tpu.memory_space<vmem>>, %arg5: memref<1x256xf32, #tpu.memory_space<vmem>>, %arg6: memref<256x128xbf16, #tpu.memory_space<vmem>>, %arg7: memref<1x128xf32, #tpu.memory_space<vmem>>, %arg8: memref<128x128xbf16, #tpu.memory_space<vmem>>, %arg9: memref<1x128xf32, #tpu.memory_space<vmem>>, %arg10: memref<128x128xbf16, #tpu.memory_space<vmem>>, %arg11: memref<1x128xf32, #tpu.memory_space<vmem>>, %arg12: memref<8x128xf32, #tpu.memory_space<vmem>>) attributes {dimension_semantics = [#tpu.dimension_semantics<parallel>], iteration_bounds = array<i64: 1>, scalar_prefetch = 0 : i64, scratch_operands = 0 : i64, tpu.core_type = #tpu.core_type<tc>, window_params = [{transform_indices = @transform_0, window_bounds = array<i64: 8, 32>}, {pipeline_mode = #tpu.pipeline_mode<synchronous>, transform_indices = @transform_1, window_bounds = array<i64: 32, 128>}, {pipeline_mode = #tpu.pipeline_mode<synchronous>, transform_indices = @transform_2, window_bounds = array<i64: 1, 128>}, {pipeline_mode = #tpu.pipeline_mode<synchronous>, transform_indices = @transform_3, window_bounds = array<i64: 128, 256>}, {pipeline_mode = #tpu.pipeline_mode<synchronous>, transform_indices = @transform_4, window_bounds = array<i64: 1, 256>}, {pipeline_mode = #tpu.pipeline_mode<synchronous>, transform_indices = @transform_5, window_bounds = array<i64: 256, 128>}, {pipeline_mode = #tpu.pipeline_mode<synchronous>, transform_indices = @transform_6, window_bounds = array<i64: 1, 128>}, {pipeline_mode = #tpu.pipeline_mode<synchronous>, transform_indices = @transform_7, window_bounds = array<i64: 128, 128>}, {pipeline_mode = #tpu.pipeline_mode<synchronous>, transform_indices = @transform_8, window_bounds = array<i64: 1, 128>}, {pipeline_mode = #tpu.pipeline_mode<synchronous>, transform_indices = @transform_9, window_bounds = array<i64: 128, 128>}, {pipeline_mode = #tpu.pipeline_mode<synchronous>, transform_indices = @transform_10, window_bounds = array<i64: 1, 128>}, {transform_indices = @transform_11, window_bounds = array<i64: 8, 128>}]} {
    %c0 = arith.constant 0 : index
    %c0_0 = arith.constant 0 : index
    %0 = vector.load %arg1[%c0, %c0_0] : memref<8x32xf32, #tpu.memory_space<vmem>>, vector<8x32xf32>
    %1 = arith.truncf %0 : vector<8x32xf32> to vector<8x32xbf16>
    %c0_1 = arith.constant 0 : index
    %c0_2 = arith.constant 0 : index
    %2 = vector.load %arg2[%c0_1, %c0_2] : memref<32x128xbf16, #tpu.memory_space<vmem>>, vector<32x128xbf16>
    %cst = arith.constant dense<0.000000e+00> : vector<8x128xf32>
    %3 = tpu.matmul %1, %2, %cst {dimension_numbers = #tpu.dot_dimension_numbers<[1], [0], [0], [1], [0, 0, 1, 1], [], []>} : vector<8x32xbf16>, vector<32x128xbf16>, vector<8x128xf32> -> vector<8x128xf32>
    %c0_3 = arith.constant 0 : index
    %c0_4 = arith.constant 0 : index
    %4 = vector.load %arg3[%c0_3, %c0_4] : memref<1x128xf32, #tpu.memory_space<vmem>>, vector<1x128xf32>
    %5 = vector.broadcast %4 : vector<1x128xf32> to vector<8x128xf32>
    %6 = arith.addf %3, %5 : vector<8x128xf32>
    %cst_5 = arith.constant 0.000000e+00 : f32
    %7 = vector.broadcast %cst_5 : f32 to vector<8x128xf32>
    %8 = arith.maximumf %6, %7 : vector<8x128xf32>
    %9 = arith.truncf %8 : vector<8x128xf32> to vector<8x128xbf16>
    %c0_6 = arith.constant 0 : index
    %c0_7 = arith.constant 0 : index
    %10 = vector.load %arg4[%c0_6, %c0_7] : memref<128x256xbf16, #tpu.memory_space<vmem>>, vector<128x256xbf16>
    %cst_8 = arith.constant dense<0.000000e+00> : vector<8x256xf32>
    %11 = tpu.matmul %9, %10, %cst_8 {dimension_numbers = #tpu.dot_dimension_numbers<[1], [0], [0], [1], [0, 0, 1, 1], [], []>} : vector<8x128xbf16>, vector<128x256xbf16>, vector<8x256xf32> -> vector<8x256xf32>
    %c0_9 = arith.constant 0 : index
    %c0_10 = arith.constant 0 : index
    %12 = vector.load %arg5[%c0_9, %c0_10] : memref<1x256xf32, #tpu.memory_space<vmem>>, vector<1x256xf32>
    %13 = vector.broadcast %12 : vector<1x256xf32> to vector<8x256xf32>
    %14 = arith.addf %11, %13 : vector<8x256xf32>
    %cst_11 = arith.constant 0.000000e+00 : f32
    %15 = vector.broadcast %cst_11 : f32 to vector<8x256xf32>
    %16 = arith.maximumf %14, %15 : vector<8x256xf32>
    %17 = arith.truncf %16 : vector<8x256xf32> to vector<8x256xbf16>
    %c0_12 = arith.constant 0 : index
    %c0_13 = arith.constant 0 : index
    %18 = vector.load %arg6[%c0_12, %c0_13] : memref<256x128xbf16, #tpu.memory_space<vmem>>, vector<256x128xbf16>
    %cst_14 = arith.constant dense<0.000000e+00> : vector<8x128xf32>
    %19 = tpu.matmul %17, %18, %cst_14 {dimension_numbers = #tpu.dot_dimension_numbers<[1], [0], [0], [1], [0, 0, 1, 1], [], []>} : vector<8x256xbf16>, vector<256x128xbf16>, vector<8x128xf32> -> vector<8x128xf32>
    %c0_15 = arith.constant 0 : index
    %c0_16 = arith.constant 0 : index
    %20 = vector.load %arg7[%c0_15, %c0_16] : memref<1x128xf32, #tpu.memory_space<vmem>>, vector<1x128xf32>
    %21 = vector.broadcast %20 : vector<1x128xf32> to vector<8x128xf32>
    %22 = arith.addf %19, %21 : vector<8x128xf32>
    %cst_17 = arith.constant 0.000000e+00 : f32
    %23 = vector.broadcast %cst_17 : f32 to vector<8x128xf32>
    %24 = arith.maximumf %22, %23 : vector<8x128xf32>
    %25 = arith.truncf %24 : vector<8x128xf32> to vector<8x128xbf16>
    %c0_18 = arith.constant 0 : index
    %c0_19 = arith.constant 0 : index
    %26 = vector.load %arg8[%c0_18, %c0_19] : memref<128x128xbf16, #tpu.memory_space<vmem>>, vector<128x128xbf16>
    %cst_20 = arith.constant dense<0.000000e+00> : vector<8x128xf32>
    %27 = tpu.matmul %25, %26, %cst_20 {dimension_numbers = #tpu.dot_dimension_numbers<[1], [0], [0], [1], [0, 0, 1, 1], [], []>} : vector<8x128xbf16>, vector<128x128xbf16>, vector<8x128xf32> -> vector<8x128xf32>
    %c0_21 = arith.constant 0 : index
    %c0_22 = arith.constant 0 : index
    %28 = vector.load %arg9[%c0_21, %c0_22] : memref<1x128xf32, #tpu.memory_space<vmem>>, vector<1x128xf32>
    %29 = vector.broadcast %28 : vector<1x128xf32> to vector<8x128xf32>
    %30 = arith.addf %27, %29 : vector<8x128xf32>
    %cst_23 = arith.constant 0.000000e+00 : f32
    %31 = vector.broadcast %cst_23 : f32 to vector<8x128xf32>
    %32 = arith.maximumf %30, %31 : vector<8x128xf32>
    %33 = arith.truncf %32 : vector<8x128xf32> to vector<8x128xbf16>
    %c0_24 = arith.constant 0 : index
    %c0_25 = arith.constant 0 : index
    %34 = vector.load %arg10[%c0_24, %c0_25] : memref<128x128xbf16, #tpu.memory_space<vmem>>, vector<128x128xbf16>
    %cst_26 = arith.constant dense<0.000000e+00> : vector<8x128xf32>
    %35 = tpu.matmul %33, %34, %cst_26 {dimension_numbers = #tpu.dot_dimension_numbers<[1], [0], [0], [1], [0, 0, 1, 1], [], []>} : vector<8x128xbf16>, vector<128x128xbf16>, vector<8x128xf32> -> vector<8x128xf32>
    %c0_27 = arith.constant 0 : index
    %c0_28 = arith.constant 0 : index
    %36 = vector.load %arg11[%c0_27, %c0_28] : memref<1x128xf32, #tpu.memory_space<vmem>>, vector<1x128xf32>
    %37 = vector.broadcast %36 : vector<1x128xf32> to vector<8x128xf32>
    %38 = arith.addf %35, %37 : vector<8x128xf32>
    %c0_29 = arith.constant 0 : index
    %c0_30 = arith.constant 0 : index
    %39 = vector.load %arg12[%c0_29, %c0_30] : memref<8x128xf32, #tpu.memory_space<vmem>>, vector<8x128xf32>
    tpu.vector_store %arg12[%c0_29, %c0_30], %38 {strides = array<i32>} : memref<8x128xf32, #tpu.memory_space<vmem>>, vector<8x128xf32>,
    return
  }
  func.func @transform_0(%arg0: i32) -> (i32, i32) {
    %c0_i32 = arith.constant 0 : i32
    %c0_i32_0 = arith.constant 0 : i32
    return %arg0, %c0_i32 : i32, i32
  }
  func.func @transform_1(%arg0: i32) -> (i32, i32) {
    %c0_i32 = arith.constant 0 : i32
    %c0_i32_0 = arith.constant 0 : i32
    %c0_i32_1 = arith.constant 0 : i32
    return %c0_i32, %c0_i32_0 : i32, i32
  }
  func.func @transform_2(%arg0: i32) -> (i32, i32) {
    %c0_i32 = arith.constant 0 : i32
    %c0_i32_0 = arith.constant 0 : i32
    %c0_i32_1 = arith.constant 0 : i32
    return %c0_i32, %c0_i32_0 : i32, i32
  }
  func.func @transform_3(%arg0: i32) -> (i32, i32) {
    %c0_i32 = arith.constant 0 : i32
    %c0_i32_0 = arith.constant 0 : i32
    %c0_i32_1 = arith.constant 0 : i32
    return %c0_i32, %c0_i32_0 : i32, i32
  }
  func.func @transform_4(%arg0: i32) -> (i32, i32) {
    %c0_i32 = arith.constant 0 : i32
    %c0_i32_0 = arith.constant 0 : i32
    %c0_i32_1 = arith.constant 0 : i32
    return %c0_i32, %c0_i32_0 : i32, i32
  }
  func.func @transform_5(%arg0: i32) -> (i32, i32) {
    %c0_i32 = arith.constant 0 : i32
    %c0_i32_0 = arith.constant 0 : i32
    %c0_i32_1 = arith.constant 0 : i32
    return %c0_i32, %c0_i32_0 : i32, i32
  }
  func.func @transform_6(%arg0: i32) -> (i32, i32) {
    %c0_i32 = arith.constant 0 : i32
    %c0_i32_0 = arith.constant 0 : i32
    %c0_i32_1 = arith.constant 0 : i32
    return %c0_i32, %c0_i32_0 : i32, i32
  }
  func.func @transform_7(%arg0: i32) -> (i32, i32) {
    %c0_i32 = arith.constant 0 : i32
    %c0_i32_0 = arith.constant 0 : i32
    %c0_i32_1 = arith.constant 0 : i32
    return %c0_i32, %c0_i32_0 : i32, i32
  }
  func.func @transform_8(%arg0: i32) -> (i32, i32) {
    %c0_i32 = arith.constant 0 : i32
    %c0_i32_0 = arith.constant 0 : i32
    %c0_i32_1 = arith.constant 0 : i32
    return %c0_i32, %c0_i32_0 : i32, i32
  }
  func.func @transform_9(%arg0: i32) -> (i32, i32) {
    %c0_i32 = arith.constant 0 : i32
    %c0_i32_0 = arith.constant 0 : i32
    %c0_i32_1 = arith.constant 0 : i32
    return %c0_i32, %c0_i32_0 : i32, i32
  }
  func.func @transform_10(%arg0: i32) -> (i32, i32) {
    %c0_i32 = arith.constant 0 : i32
    %c0_i32_0 = arith.constant 0 : i32
    %c0_i32_1 = arith.constant 0 : i32
    return %c0_i32, %c0_i32_0 : i32, i32
  }
  func.func @transform_11(%arg0: i32) -> (i32, i32) {
    %c0_i32 = arith.constant 0 : i32
    %c0_i32_0 = arith.constant 0 : i32
    return %arg0, %c0_i32 : i32, i32
  }
}

</mosaic_0001>

<bundles_post_ra>
// kernel: simple_nn_old_forward.1
= control target key start
LH: loop header
LB: loop body
LE: loop exit
PB: predicated region body
PF: predicated region fallthrough
CT: control target
= control target key end

     0   :  { %16 = vsyncpa [#allocation3], 0  ;;  %s1278_s0 = inlined_call_operand.hbm [shape: f32[8,32], index: 0, kind: input, shape index: {}]   ;;  %s1279_s1 = inlined_call_operand.hbm [shape: bf16[32,128], index: 1, kind: input, shape index: {}]   ;;  %s1280_s2 = inlined_call_operand.vmem [shape: f32[1,128], index: 2, kind: input, shape index: {}]   ;;  %s1281_s3 = inlined_call_operand.hbm [shape: bf16[128,256], index: 3, kind: input, shape index: {}]   ;;  %s1282_s4 = inlined_call_operand.vmem [shape: f32[1,256], index: 4, kind: input, shape index: {}]   ;;  %s1283_s5 = inlined_call_operand.hbm [shape: bf16[256,128], index: 5, kind: input, shape index: {}]   ;;  %s1284_s6 = inlined_call_operand.vmem [shape: f32[1,128], index: 6, kind: input, shape index: {}]   ;;  %s1285_s7 = inlined_call_operand.hbm [shape: bf16[128,128], index: 7, kind: input, shape index: {}]   ;;  %s1286_s8 = inlined_call_operand.vmem [shape: f32[1,128], index: 8, kind: input, shape index: {}]   ;;  %s1287_s9 = inlined_call_operand.hbm [shape: bf16[128,128], index: 9, kind: input, shape index: {}]   ;;  %s1288_s10 = inlined_call_operand.vmem [shape: f32[1,128], index: 10, kind: input, shape index: {}]   ;;  %s1289_s11 = inlined_call_operand.hbm [shape: f32[8,128], index: 11, kind: output, shape index: {}]  }
   0x1   :  { %17 = vsyncpa [#allocation6], 0 }
   0x2   :  { %18 = vsyncpa [#allocation9], 0 }
   0x3   :  { %19 = vsyncpa [#allocation12], 0 }
   0x4   :  { %20 = vsyncpa [#allocation4], 0  ;;  %s1132_s17 = smov [#allocation5]  }
   0x5   :  { %s36_s18 = sshll.u32 %s1132_s17, 4  ;;  %s37_s18 = int_to_ptr.vmem [resolvable:$true] %s36_s18 }
   0x6   :  { %s990_s19 = scalar_lea.vmem %s37_s18, 256  ;;  %p995_p1 = scmp.lt.s32.totalorder %s37_s18, %s37_s18 }
   0x7   :  { %p991_p0 = scmp.ne.s32.totalorder %s37_s18, %s990_s19  ;;  %p996_p2 = scmp.lt.s32.totalorder %s990_s19, %s990_s19 }
   0x9   :  { %p997_p3 = por %p996_p2, %p995_p1 }
   0xb   :  { %p998_p4 = pnand %p997_p3, %p991_p0 }
   0xd   :  { %1001 = shalt.err (!%p998_p4)
}
   0xe   :  { %s1133_s20 = smov 64   ;;  %s1134_s21 = smov 4  }
   0xf   :  { %42 = dma.hbm_to_vmem [thread:$0]  %s1279_s1, 256, %s37_s18, [#allocation6], %s1133_s20, %s1133_s20, %s1134_s21  }
  0x10   :  { %s1135_s24 = smov [#allocation8]   ;;  %s1136_s26 = smov [#allocation2]  }
  0x11   :  { %s64_s25 = sshll.u32 %s1135_s24, 4  ;;  %s27_s27 = sshll.u32 %s1136_s26, 4  ;;  %s65_s25 = int_to_ptr.vmem [resolvable:$true] %s64_s25  ;;  %s28_s27 = int_to_ptr.vmem [resolvable:$true] %s27_s27 }
  0x12   :  { %s1010_s28 = scalar_lea.vmem %s65_s25, 2048  ;;  %p1015_p6 = scmp.lt.s32.totalorder %s65_s25, %s65_s25 }
  0x13   :  { %p1011_p5 = scmp.ne.s32.totalorder %s65_s25, %s1010_s28  ;;  %p1016_p7 = scmp.lt.s32.totalorder %s1010_s28, %s1010_s28 }
  0x15   :  { %p1017_p8 = por %p1016_p7, %p1015_p6 }
  0x17   :  { %p1018_p9 = pnand %p1017_p8, %p1011_p5 }
  0x19   :  { %1021 = shalt.err (!%p1018_p9)
}
  0x1a   :  { %70 = dma.hbm_to_vmem [thread:$0]  %s1283_s5, 2048, %s65_s25, [#allocation9], %s1133_s20, %s1133_s20, %s1134_s21  }
  0x1b   :  { %s1030_s1 = scalar_lea.vmem %s28_s27, 128  ;;  %p1035_p11 = scmp.lt.s32.totalorder %s28_s27, %s28_s27 }
  0x1c   :  { %p1031_p10 = scmp.ne.s32.totalorder %s28_s27, %s1030_s1  ;;  %p1036_p12 = scmp.lt.s32.totalorder %s1030_s1, %s1030_s1 }
  0x1e   :  { %p1037_p13 = por %p1036_p12, %p1035_p11 }
  0x20   :  { %p1038_p0 = pnand %p1037_p13, %p1031_p10 }
  0x22   :  { %1041 = shalt.err (!%p1038_p0)
}
  0x23   :  { %30 = dma.hbm_to_vmem [thread:$0]  %s1278_s0, 128, %s28_s27, [#allocation3]  }
  0x24   :  { %s1137_s14 = smov [#allocation7]  }
  0x25   :  { %s50_s15 = sshll.u32 %s1137_s14, 4  ;;  %s51_s15 = int_to_ptr.vmem [resolvable:$true] %s50_s15 }
  0x26   :  { %s1050_s16 = scalar_lea.vmem %s51_s15, 2048  ;;  %p1055_p2 = scmp.lt.s32.totalorder %s51_s15, %s51_s15 }
  0x27   :  { %p1051_p1 = scmp.ne.s32.totalorder %s51_s15, %s1050_s16  ;;  %p1056_p3 = scmp.lt.s32.totalorder %s1050_s16, %s1050_s16 }
  0x29   :  { %p1057_p4 = por %p1056_p3, %p1055_p2 }
  0x2b   :  { %p1058_p5 = pnand %p1057_p4, %p1051_p1 }
  0x2d   :  { %1061 = shalt.err (!%p1058_p5)
}
  0x2e   :  { %s1138_s5 = smov 128   ;;  %s1139_s17 = smov 8  }
  0x2f   :  { %56 = dma.hbm_to_vmem [thread:$0]  %s1281_s3, 2048, %s51_s15, [#allocation6], %s1138_s5, %s1138_s5, %s1139_s17  }
  0x30   :  { %s1140_s22 = smov [#allocation10]   ;;  %s1141_s24 = smov [#allocation11]  }
  0x31   :  { %s78_s23 = sshll.u32 %s1140_s22, 4  ;;  %s92_s0 = sshll.u32 %s1141_s24, 4  ;;  %s79_s23 = int_to_ptr.vmem [resolvable:$true] %s78_s23  ;;  %s93_s0 = int_to_ptr.vmem [resolvable:$true] %s92_s0 }
  0x32   :  { %s1070_s25 = scalar_lea.vmem %s79_s23, 1024  ;;  %p1075_p7 = scmp.lt.s32.totalorder %s79_s23, %s79_s23 }
  0x33   :  { %p1071_p6 = scmp.ne.s32.totalorder %s79_s23, %s1070_s25  ;;  %p1076_p8 = scmp.lt.s32.totalorder %s1070_s25, %s1070_s25 }
  0x35   :  { %p1077_p9 = por %p1076_p8, %p1075_p7 }
  0x37   :  { %p1078_p10 = pnand %p1077_p9, %p1071_p6 }
  0x39   :  { %1081 = shalt.err (!%p1078_p10)
}
  0x3a   :  { %84 = dma.hbm_to_vmem [thread:$0]  %s1285_s7, 1024, %s79_s23, [#allocation9], %s1133_s20, %s1133_s20, %s1134_s21  }
  0x3b   :  { %s1090_s3 = scalar_lea.vmem %s93_s0, 1024  ;;  %p1095_p12 = scmp.lt.s32.totalorder %s93_s0, %s93_s0 }
  0x3c   :  { %p1091_p11 = scmp.ne.s32.totalorder %s93_s0, %s1090_s3  ;;  %p1096_p13 = scmp.lt.s32.totalorder %s1090_s3, %s1090_s3 }
  0x3e   :  { %p1097_p0 = por %p1096_p13, %p1095_p12 }
  0x40   :  { %p1098_p1 = pnand %p1097_p0, %p1091_p11 }
  0x42   :  { %1101 = shalt.err (!%p1098_p1)
}
  0x43   :  { %98 = dma.hbm_to_vmem [thread:$0]  %s1287_s9, 1024, %s93_s0, [#allocation12], %s1133_s20, %s1133_s20, %s1134_s21  }
  0x44   :  { %1122 = dma.done.wait [#allocation3], 128  }
  0x45   :  { %1123 = vsyncadd [#allocation3], 4294967168 }
  0x46   :  { %1124 = dma.done.wait [#allocation6], 2304  }
  0x47   :  { %1125 = vsyncadd [#allocation6], 4294964992 }
  0x48   :  { %1126 = dma.done.wait [#allocation9], 3072  }
  0x49   :  { %1127 = vsyncadd [#allocation9], 4294964224 }
  0x4a   :  { %1128 = dma.done.wait [#allocation12], 1024  }
  0x4b   :  { %1129 = vsyncadd [#allocation12], 4294966272  ;;  %v1142_v0 = vmov 0.0   ;;  %vm1143_vm0 = vmmov 0   ;;  %v924_v1 = vld [vmem:[#allocation5 + $0x8] sm:$0xff]   ;;  %v925_v2 = vld [vmem:[#allocation5] sm:$0xff]   ;;  %v209_v51 = vlaneseq }
  0x4c   :  { %862 = vmatprep.subr.bf16.mxu0 %v1142_v0  ;;  %866 = vmatprep.mubr.msk.bf16.mxu0 %vm1143_vm0, %v1142_v0  ;;  %v120_v3 = vld [vmem:[#allocation2] sm:$0xff]  ;;  %v926_v4 = vld [vmem:[#allocation7 + $0x74] ss:$8 sps:$4 sm:$0xff]   ;;  %v928_v5 = vld [vmem:[#allocation7 + $0x70] ss:$8 sps:$4 sm:$0xff]   ;;  %vm145_vm1 = vcmask 261120  }
  0x4d   :  { %863 = vmatpush3.bf16.msra.mxu0 %v924_v1  ;;  %v929_v6 = vld [vmem:[#allocation7 + $0x64] ss:$8 sps:$4 sm:$0xff]   ;;  %v121_v7 = vpack.c.bf16 %v120_v3, %v120_v3  ;;  %299 = vmatprep.subr.bf16.mxu1 %v926_v4  ;;  %v931_v8 = vld [vmem:[#allocation7 + $0x60] ss:$8 sps:$4 sm:$0xff]   ;;  %v932_v9 = vld [vmem:[#allocation7 + $0x54] ss:$8 sps:$4 sm:$0xff]  }
  0x4e   :  { %864 = vmatprep.subr.bf16.mxu0 %v1142_v0  ;;  %300 = vmatpush1.bf16.msra.mxu1 %v928_v5  ;;  %v934_v10 = vld [vmem:[#allocation7 + $0x50] ss:$8 sps:$4 sm:$0xff]   ;;  %v935_v11 = vld [vmem:[#allocation7 + $0x44] ss:$8 sps:$4 sm:$0xff]   ;;  %v937_v12 = vld [vmem:[#allocation7 + $0x40] ss:$8 sps:$4 sm:$0xff]  }
  0x4f   :  { %301 = vmatprep.subr.bf16.mxu1 %v929_v6  ;;  %v938_v13 = vld [vmem:[#allocation7 + $0x34] ss:$8 sps:$4 sm:$0xff]   ;;  %v940_v14 = vld [vmem:[#allocation7 + $0x30] ss:$8 sps:$4 sm:$0xff]   ;;  %v941_v15 = vld [vmem:[#allocation7 + $0x24] ss:$8 sps:$4 sm:$0xff]  }
  0x50   :  { %v943_v16 = vld [vmem:[#allocation7 + $0x20] ss:$8 sps:$4 sm:$0xff]   ;;  %v944_v17 = vld [vmem:[#allocation7 + $0x14] ss:$8 sps:$4 sm:$0xff]   ;;  %v946_v18 = vld [vmem:[#allocation7 + $0x10] ss:$8 sps:$4 sm:$0xff]  }
  0x51   :  { %865 = vmatpush3.bf16.msra.mxu0 %v925_v2  ;;  %v947_v19 = vld [vmem:[#allocation7 + $0x4] ss:$8 sps:$4 sm:$0xff]   ;;  %v949_v20 = vld [vmem:[#allocation7] ss:$8 sps:$4 sm:$0xff]   ;;  %v1144_v21 = vmov 0   ;;  %v950_v22 = vld [vmem:[#allocation8 + $0x78] sm:$0xff]  }
  0x52   :  { %302 = vmatpush1.bf16.msra.mxu1 %v931_v8  ;;  %331 = vmatprep.mubr.bf16.mxu1 %v1144_v21  ;;  %v951_v23 = vld [vmem:[#allocation8 + $0x38] sm:$0xff]   ;;  %v952_v24 = vld [vmem:[#allocation8 + $0x70] sm:$0xff]   ;;  %v954_v26 = vld [vmem:[#allocation8 + $0x68] sm:$0xff]   ;;  %v210_v52 = vshrl.u32 %v209_v51, 7  ;;  %s1145_s13 = smov [#allocation13]  }
  0x53   :  { %303 = vmatprep.subr.bf16.mxu1 %v932_v9  ;;  %822 = vmatprep.subr.bf16.mxu0 %v950_v22  ;;  %v953_v25 = vld [vmem:[#allocation8 + $0x30] sm:$0xff]   ;;  %v955_v27 = vld [vmem:[#allocation8 + $0x28] sm:$0xff]   ;;  %v956_v28 = vld [vmem:[#allocation8 + $0x60] sm:$0xff]   ;;  %s752_s14 = sshll.u32 %s1145_s13, 4  ;;  %s753_s14 = int_to_ptr.vmem [resolvable:$true] %s752_s14 }
  0x54   :  { %867 = vmatmul.mubr.msk.bf16.vlgmr.msra.gmra.mxu0 %vm145_vm1, %v121_v7  ;;  %v957_v29 = vld [vmem:[#allocation8 + $0x20] sm:$0xff]   ;;  %v958_v30 = vld [vmem:[#allocation8 + $0x58] sm:$0xff]   ;;  %v960_v32 = vld [vmem:[#allocation8 + $0x50] sm:$0xff]   ;;  %v211_v53 = vsub.s32 0, %v210_v52  ;;  %v215_v55 = vsub.s32 1, %v210_v52  ;;  %p1107_p3 = scmp.lt.s32.totalorder %s753_s14, %s753_s14 }
  0x55   :  { %823 = vmatpush3.bf16.msra.mxu0 %v951_v23  ;;  %v959_v31 = vld [vmem:[#allocation8 + $0x18] sm:$0xff]   ;;  %v961_v33 = vld [vmem:[#allocation8 + $0x10] sm:$0xff]   ;;  %v764_v34 = vld [vmem:[%s1280_s2] ss:$0 sm:$0xff] }
  0x56   :  { %304 = vmatpush1.bf16.msra.mxu1 %v934_v10  ;;  %824 = vmatprep.subr.bf16.mxu0 %v952_v24  ;;  %v962_v42 = vld [vmem:[#allocation8 + $0x48] sm:$0xff]   ;;  %v964_v44 = vld [vmem:[#allocation8 + $0x40] sm:$0xff]   ;;  %v966_v46 = vld [vmem:[#allocation10 + $0x38] sm:$0xff]  }
  0x57   :  { %305 = vmatprep.subr.bf16.mxu1 %v935_v11  ;;  %v963_v43 = vld [vmem:[#allocation8 + $0x8] sm:$0xff]   ;;  %v965_v45 = vld [vmem:[#allocation8] sm:$0xff]   ;;  %v967_v47 = vld [vmem:[#allocation10 + $0x30] sm:$0xff]  }
  0x58   :  { %v968_v48 = vld [vmem:[#allocation10 + $0x28] sm:$0xff]   ;;  %v969_v49 = vld [vmem:[#allocation10 + $0x20] sm:$0xff]   ;;  %v970_v50 = vld [vmem:[#allocation10 + $0x18] sm:$0xff]  }
  0x59   :  { %825 = vmatpush3.bf16.msra.mxu0 %v953_v25  ;;  %v207_v54 = vld [vmem:[%s1282_s4] sm:$0x3]  ;;  %v971_v5 = vld [vmem:[#allocation10 + $0x10] sm:$0xff]   ;;  %v973_v7 = vld [vmem:[#allocation10] sm:$0xff]  }
  0x5a   :  { %306 = vmatpush1.bf16.msra.mxu1 %v937_v12  ;;  %826 = vmatprep.subr.bf16.mxu0 %v954_v26  ;;  %v212_v56 = vrot.slane %v207_v54, %v211_v53  ;;  %v216_v57 = vrot.slane %v207_v54, %v215_v55  ;;  %v972_v6 = vld [vmem:[#allocation10 + $0x8] sm:$0xff]   ;;  %v974_v8 = vld [vmem:[#allocation11 + $0x38] sm:$0xff]   ;;  %v975_v9 = vld [vmem:[#allocation11 + $0x30] sm:$0xff]  }
  0x5b   :  { %307 = vmatprep.subr.bf16.mxu1 %v938_v13  ;;  %v976_v10 = vld [vmem:[#allocation11 + $0x28] sm:$0xff]   ;;  %v977_v11 = vld [vmem:[#allocation11 + $0x20] sm:$0xff]   ;;  %v978_v12 = vld [vmem:[#allocation11 + $0x18] sm:$0xff]  }
  0x5c   :  { %v979_v13 = vld [vmem:[#allocation11 + $0x10] sm:$0xff]   ;;  %v980_v23 = vld [vmem:[#allocation11 + $0x8] sm:$0xff]   ;;  %v981_v24 = vld [vmem:[#allocation11] sm:$0xff]  }
  0x5d   :  { %827 = vmatpush3.bf16.msra.mxu0 %v955_v27  ;;  %v801_v25 = vld [vmem:[%s1286_s8] ss:$0 sm:$0xff]  ;;  %s1102_s8 = scalar_lea.vmem %s753_s14, 128 }
  0x5e   :  { %308 = vmatpush1.bf16.msra.mxu1 %v940_v14  ;;  %828 = vmatprep.subr.bf16.mxu0 %v956_v28  ;;  %p1103_p2 = scmp.ne.s32.totalorder %s753_s14, %s1102_s8  ;;  %p1108_p4 = scmp.lt.s32.totalorder %s1102_s8, %s1102_s8 }
  0x5f   :  { %309 = vmatprep.subr.bf16.mxu1 %v941_v15  ;;  %v784_v15 = vld [vmem:[%s1284_s6] ss:$0 sm:$0xff] }
  0x60   :  { %p1109_p5 = por %p1108_p4, %p1107_p3 }
  0x61   :  { %829 = vmatpush3.bf16.msra.mxu0 %v957_v29 }
  0x62   :  { %310 = vmatpush1.bf16.msra.mxu1 %v943_v16  ;;  %830 = vmatprep.subr.bf16.mxu0 %v958_v30  ;;  %p1110_p6 = pnand %p1109_p5, %p1103_p2 }
  0x63   :  { %311 = vmatprep.subr.bf16.mxu1 %v944_v17 }
  0x65   :  { %831 = vmatpush3.bf16.msra.mxu0 %v959_v31 }
  0x66   :  { %312 = vmatpush1.bf16.msra.mxu1 %v946_v18  ;;  %832 = vmatprep.subr.bf16.mxu0 %v960_v32 }
  0x67   :  { %313 = vmatprep.subr.bf16.mxu1 %v947_v19 }
  0x69   :  { %833 = vmatpush3.bf16.msra.mxu0 %v961_v33  ;;  %v810_v33 = vld [vmem:[%s1288_s10] ss:$0 sm:$0xff] }
  0x6a   :  { %314 = vmatpush1.bf16.msra.mxu1 %v949_v20  ;;  %834 = vmatprep.subr.bf16.mxu0 %v962_v42 }
  0x6b   :  { %870 = vmatprep.subr.bf16.mxu1 %v1142_v0 }
  0x6d   :  { %835 = vmatpush3.bf16.msra.mxu0 %v963_v43 }
  0x6e   :  { %836 = vmatprep.subr.bf16.mxu0 %v964_v44 }
  0x71   :  { %837 = vmatpush3.bf16.msra.mxu0 %v965_v45 }
  0x72   :  { %890 = vmatprep.subr.bf16.mxu0 %v1142_v0 }
 0x114   :  { %v183_v35 = vpop.f32.mrf.mxu0 }
 0x115   :  { %v184_v36 = vadd.f32 %v764_v34, %v183_v35 }
 0x116   :  { %v868_v37 = vpop.f32.mrf.mxu0 }
 0x117   :  { %v189_v38 = vmax.f32 %v184_v36, 0.0 }
 0x118   :  { %v186_v39 = vpop.f32.mrf.mxu0 }
 0x119   :  { %v190_v40 = vpack.c.bf16 %v189_v38, %v189_v38 }
 0x11a   :  { %v869_v41 = vpop.f32.mrf.mxu0 }
 0x11b   :  { %332 = vmatmul.mubr.bf16.vlgmr.msra.gmra.mxu1 %v190_v40 }
 0x11c   :  { %886 = vmatprep.mubr.msk.bf16.mxu1 %vm1143_vm0, %v1142_v0  ;;  %871 = vmatpush3.bf16.msra.mxu1 %v966_v46 }
 0x11d   :  { %872 = vmatprep.subr.bf16.mxu1 %v1142_v0 }
 0x120   :  { %873 = vmatpush3.bf16.msra.mxu1 %v967_v47 }
 0x121   :  { %874 = vmatprep.subr.bf16.mxu1 %v1142_v0 }
 0x124   :  { %875 = vmatpush3.bf16.msra.mxu1 %v968_v48 }
 0x125   :  { %876 = vmatprep.subr.bf16.mxu1 %v1142_v0 }
 0x128   :  { %877 = vmatpush3.bf16.msra.mxu1 %v969_v49 }
 0x129   :  { %878 = vmatprep.subr.bf16.mxu1 %v1142_v0 }
 0x12c   :  { %879 = vmatpush3.bf16.msra.mxu1 %v970_v50 }
 0x12d   :  { %880 = vmatprep.subr.bf16.mxu1 %v1142_v0 }
 0x130   :  { %881 = vmatpush3.bf16.msra.mxu1 %v971_v5 }
 0x131   :  { %882 = vmatprep.subr.bf16.mxu1 %v1142_v0 }
 0x134   :  { %883 = vmatpush3.bf16.msra.mxu1 %v972_v6 }
 0x135   :  { %884 = vmatprep.subr.bf16.mxu1 %v1142_v0 }
 0x138   :  { %885 = vmatpush3.bf16.msra.mxu1 %v973_v7 }
 0x1db   :  { %v333_v58 = vpop.f32.mrf.mxu1 }
 0x1dc   :  { %v334_v59 = vadd.f32 %v333_v58, %v212_v56 }
 0x1dd   :  { %v335_v60 = vpop.f32.mrf.mxu1 }
 0x1de   :  { %v336_v61 = vadd.f32 %v335_v60, %v216_v57  ;;  %v340_v62 = vmax.f32 %v334_v59, 0.0 }
 0x1df   :  { %v337_v63 = vpop.f32.mrf.mxu1 }
 0x1e0   :  { %v341_v1 = vmax.f32 %v336_v61, 0.0  ;;  %v342_v4 = vpack.c.bf16 %v340_v62, %v340_v62 }
 0x1e1   :  { %v338_v2 = vpop.f32.mrf.mxu1 }
 0x1e2   :  { %v343_v3 = vpack.c.bf16 %v341_v1, %v341_v1 }
 0x1e4   :  { %511 = vmatprep.mubr.bf16.mxu0 %v343_v3 }
 0x1e5   :  { %512 = vmatmul.mubr.bf16.vlgmr.msra.gmra.mxu0 %v342_v4 }
 0x1e6   :  { %906 = vmatprep.mubr.msk.bf16.mxu0 %vm1143_vm0, %v1142_v0  ;;  %891 = vmatpush3.bf16.msra.mxu0 %v974_v8 }
 0x1e7   :  { %892 = vmatprep.subr.bf16.mxu0 %v1142_v0 }
 0x1ea   :  { %893 = vmatpush3.bf16.msra.mxu0 %v975_v9 }
 0x1eb   :  { %894 = vmatprep.subr.bf16.mxu0 %v1142_v0 }
 0x1ee   :  { %895 = vmatpush3.bf16.msra.mxu0 %v976_v10 }
 0x1ef   :  { %896 = vmatprep.subr.bf16.mxu0 %v1142_v0 }
 0x1f2   :  { %897 = vmatpush3.bf16.msra.mxu0 %v977_v11 }
 0x1f3   :  { %898 = vmatprep.subr.bf16.mxu0 %v1142_v0 }
 0x1f6   :  { %899 = vmatpush3.bf16.msra.mxu0 %v978_v12 }
 0x1f7   :  { %900 = vmatprep.subr.bf16.mxu0 %v1142_v0 }
 0x1fa   :  { %901 = vmatpush3.bf16.msra.mxu0 %v979_v13 }
 0x1fb   :  { %902 = vmatprep.subr.bf16.mxu0 %v1142_v0 }
 0x1fe   :  { %903 = vmatpush3.bf16.msra.mxu0 %v980_v23 }
 0x1ff   :  { %904 = vmatprep.subr.bf16.mxu0 %v1142_v0 }
 0x202   :  { %905 = vmatpush3.bf16.msra.mxu0 %v981_v24 }
 0x2a5   :  { %v838_v14 = vpop.f32.mrf.mxu0 }
 0x2a7   :  { %v839_v16 = vpop.f32.mrf.mxu0 }
 0x2a8   :  { %v840_v17 = vadd.f32 %v839_v16, %v838_v14 }
 0x2a9   :  { %v841_v18 = vpop.f32.mrf.mxu0 }
 0x2aa   :  { %v514_v19 = vadd.f32 %v840_v17, %v784_v15 }
 0x2ab   :  { %v842_v20 = vpop.f32.mrf.mxu0 }
 0x2ac   :  { %v519_v21 = vmax.f32 %v514_v19, 0.0 }
 0x2ae   :  { %v520_v22 = vpack.c.bf16 %v519_v21, %v519_v21 }
 0x2b0   :  { %887 = vmatmul.mubr.bf16.vlgmr.msra.gmra.mxu1 %v520_v22 }
 0x370   :  { %v626_v26 = vpop.f32.mrf.mxu1 }
 0x371   :  { %v627_v27 = vadd.f32 %v801_v25, %v626_v26 }
 0x372   :  { %v888_v28 = vpop.f32.mrf.mxu1 }
 0x373   :  { %v632_v29 = vmax.f32 %v627_v27, 0.0 }
 0x374   :  { %v629_v30 = vpop.f32.mrf.mxu1 }
 0x375   :  { %v633_v31 = vpack.c.bf16 %v632_v29, %v632_v29 }
 0x376   :  { %v889_v32 = vpop.f32.mrf.mxu1 }
 0x377   :  { %907 = vmatmul.mubr.bf16.vlgmr.msra.gmra.mxu0 %v633_v31 }
 0x437   :  { %v739_v0 = vpop.f32.mrf.mxu0 }
 0x438   :  { %v740_v34 = vadd.f32 %v810_v33, %v739_v0 }
 0x439   :  { %v908_v35 = vpop.f32.mrf.mxu0 }
 0x43a   :  { %745 = vst [vmem:[#allocation13] sm:$0xff] %v740_v34 }
 0x43b   :  { %v742_v36 = vpop.f32.mrf.mxu0 }
 0x43c   :  { %1113 = shalt.err (!%p1110_p6)
}
 0x43d   :  { %755 = dma.vmem_to_hbm [thread:$0]  %s753_s14, 128, %s1289_s11, [#allocation4]   ;;  %v909_v37 = vpop.f32.mrf.mxu0 }
 0x43e   :  { %1130 = dma.done.wait [#allocation4], 128  }
 0x43f   :  { %1131 = vsyncadd [#allocation4], 4294967168 }
 0x440   :  { %759 = vsyncpa [#allocation3], 1 }
 0x441   :  { %760 = vsyncpa [#allocation6], 1 }
 0x442   :  { %761 = vsyncpa [#allocation9], 1 }
 0x443   :  { %762 = vsyncpa [#allocation12], 1 }
 0x444   :  { %763 = vsyncpa [#allocation4], 1 }

</bundles_post_ra>
